<compile_context>
chip_gen: v5e
topology: v5e:2x2
jax: 0.10.0
libtpu: 0.0.40
codegen_flags: <defaults>
</compile_context>

<pallas_src>
import functools
import math

import jax
import jax.numpy as jnp
from jax.experimental import pallas as pl
from jax.experimental.pallas import tpu as pltpu


def _round_up(x: int, m: int) -> int:
    return ((x + m - 1) // m) * m


def _make_kernel(use_dot: bool):
    """Kernel body: phase = t @ F (or t * F), out = sin(phase + bias)."""

    def kernel(t_ref, f_ref, b_ref, o_ref):
        if use_dot:
            # (rows, k_cols) @ (k_cols, width) on the otherwise-idle MXU.
            # HIGHEST precision keeps the f32 t*freq products exact enough for
            # sin() of phases up to ~1e3.
            phase = jnp.dot(t_ref[...], f_ref[...],
                            preferred_element_type=jnp.float32,
                            precision=jax.lax.Precision.HIGHEST)
        else:
            # k == 1: (rows,1) x (1,width) broadcast multiply (no matmul).
            phase = t_ref[...] * f_ref[...]
        # cos lanes carry a +pi/2 bias -> single sin pass over the whole tile.
        o_ref[...] = jnp.sin(phase + b_ref[...]).astype(o_ref.dtype)

    return kernel


@functools.partial(jax.jit, static_argnames=("dim", "out_dtype"))
def sinusoidal_pos_emb(t: jax.Array, dim: int, out_dtype=jnp.float32) -> jax.Array:
    """Pallas equivalent of SinusoidalPosEmb(dim)(t). t: (B,) -> (B, dim)."""
    # TODO(synk): dim == 2 gives half - 1 == 0 (div-by-zero), same edge case as
    # the PyTorch module; we require dim >= 4 (and even) here.
    assert dim % 2 == 0 and dim >= 4, "dim must be even and >= 4"
    B = t.shape[0]
    half = dim // 2
    out_isize = jnp.dtype(out_dtype).itemsize

    # ---- packing geometry: stored row width must be a multiple of 128 ------
    if dim % 128 == 0:
        k, dim_p = 1, dim
    else:
        k = 128 // math.gcd(dim, 128)       # smallest k with (k*dim) % 128 == 0
        if k * dim <= 4096:                 # keep F and the row width modest
            dim_p = dim
        else:                               # huge awkward dim: pad lanes instead
            k, dim_p = 1, _round_up(dim, 128)
    width = k * dim_p
    use_dot = k > 1
    k_cols = _round_up(k, 8) if use_dot else 1   # contraction dim, sublane-friendly

    # ---- frequency / bias lane rows (built once, OUTSIDE the kernel) -------
    neg_scale = -(math.log(10000.0) / (half - 1))
    freqs = jnp.exp(jnp.arange(half, dtype=jnp.float32) * jnp.float32(neg_scale))
    lane_pad = dim_p - dim
    freq_emb = jnp.concatenate(
        [freqs, freqs, jnp.zeros((lane_pad,), jnp.float32)])          # (dim_p,)
    bias_emb = jnp.concatenate(
        [jnp.zeros((half,), jnp.float32),
         jnp.full((half,), jnp.float32(math.pi / 2.0)),
         jnp.zeros((lane_pad,), jnp.float32)])                        # (dim_p,)
    bias_row = jnp.tile(bias_emb, k)[None, :]                         # (1, width)
    if use_dot:
        # Block-diagonal F: row g holds freq_emb in lanes [g*dim_p,(g+1)*dim_p).
        group = jnp.arange(width, dtype=jnp.int32) // dim_p           # (width,)
        onehot = jnp.arange(k_cols, dtype=jnp.int32)[:, None] == group[None, :]
        f_mat = jnp.where(onehot, jnp.tile(freq_emb, k)[None, :],
                          jnp.float32(0.0))                           # (k_cols, width)
    else:
        f_mat = freq_emb[None, :]                                     # (1, width)
    f_mat = f_mat.astype(jnp.float32)

    # ---- block sizing: ~4 MiB output blocks, >= 2 grid steps when possible --
    rows_needed = -(-B // k)
    row_bytes = width * 4
    block_rows = max(8, min(8192, ((4 << 20) // row_bytes) // 8 * 8))
    if rows_needed > 8:
        # keep at least 2 grid steps so v7x's 2 TensorCores both get work
        block_rows = min(block_rows, _round_up(-(-rows_needed // 2), 8))
    block_rows = min(block_rows, _round_up(rows_needed, 8))
    rows_total = _round_up(rows_needed, block_rows)
    grid = rows_total // block_rows

    # ---- pack t: (B,) -> (rows_total, k_cols) f32, zero padded --------------
    t_packed = jnp.pad(t.astype(jnp.float32),
                       (0, rows_total * k - B)).reshape(rows_total, k)
    if k_cols > k:
        t_packed = jnp.pad(t_packed, ((0, 0), (0, k_cols - k)))

    # ---- VMEM budget (double-buffered; t block is 128-lane padded in VMEM) --
    out_blk = block_rows * width * out_isize
    t_blk = block_rows * 128 * 4
    const_blk = (_round_up(k_cols, 8) + 8) * width * 4
    vmem_limit = int(min(2 * (out_blk + t_blk + const_blk) + (2 << 20), 48 << 20))
    vmem_limit = max(vmem_limit, 16 << 20)

    cost = pl.CostEstimate(
        flops=rows_total * width * (2 * k_cols + 1),
        transcendentals=rows_total * width,               # exactly one sin/elem
        bytes_accessed=(rows_total * width * out_isize
                        + rows_total * k_cols * 4 + (k_cols + 1) * width * 4),
    )

    out_packed = pl.pallas_call(
        _make_kernel(use_dot),
        out_shape=jax.ShapeDtypeStruct((rows_total, width), out_dtype),
        grid_spec=pltpu.PrefetchScalarGridSpec(
            num_scalar_prefetch=0,
            grid=(grid,),
            in_specs=[
                pl.BlockSpec((block_rows, k_cols), lambda i: (i, 0)),
                pl.BlockSpec(f_mat.shape, lambda i: (0, 0)),      # tiny, constant
                pl.BlockSpec(bias_row.shape, lambda i: (0, 0)),   # tiny, constant
            ],
            out_specs=pl.BlockSpec((block_rows, width), lambda i: (i, 0)),
        ),
        compiler_params=pltpu.CompilerParams(
            dimension_semantics=("parallel",),
            vmem_limit_bytes=vmem_limit,
        ),
        cost_estimate=cost,
    )(t_packed, f_mat, bias_row)

    # (rows_total, k*dim_p) -> (rows_total*k, dim_p): contiguous, free reshape;
    # then drop padded rows and (possibly) padded lanes.
    return out_packed.reshape(rows_total * k, dim_p)[:B, :dim]


def _reference(t: jax.Array, dim: int) -> jax.Array:
    half = dim // 2
    scale = math.log(10000.0) / (half - 1)
    freqs = jnp.exp(jnp.arange(half, dtype=jnp.float32) * -scale)
    emb = t.astype(jnp.float32)[:, None] * freqs[None, :]
    return jnp.concatenate([jnp.sin(emb), jnp.cos(emb)], axis=-1)


if __name__ == "__main__":
    root = jax.random.PRNGKey(0)
    k0, k1, k2 = jax.random.split(root, 3)

    def _check(key, B, dim):
        t = jax.random.uniform(key, (B,), dtype=jnp.float32,
                               minval=0.0, maxval=1000.0)
        out = jax.block_until_ready(sinusoidal_pos_emb(t, dim))
        ref = _reference(t, dim)
        assert out.shape == (B, dim)
        # Phases are O(t) ~ 1e3, so f32 phase rounding (and the +pi/2 fold for
        # cos lanes) gives ~1e-4-level differences vs. the XLA reference.
        assert jnp.allclose(out, ref, atol=2e-3, rtol=2e-3), (
            B, dim, float(jnp.max(jnp.abs(out - ref))))

    # Packed MXU path (dim < 128, 128 % dim == 0): k = 4 embeddings per row.
    _check(k0, B=8, dim=32)
    # k == 1 broadcast path (dim multiple of 128), ragged batch, 2 grid steps.
    _check(k1, B=50, dim=256)
    # gcd-packed path for dims that don't divide 128 (old masked-store cliff).
    _check(k2, B=13, dim=48)

    print("KERNEL_OK")
</pallas_src>

<mosaic_0001>
module attributes {stable_mosaic.version = 11 : i64} {
  func.func @kernel(%arg0: i32, %arg1: memref<8x8xf32, #tpu.memory_space<vmem>>, %arg2: memref<8x128xf32, #tpu.memory_space<vmem>>, %arg3: memref<1x128xf32, #tpu.memory_space<vmem>>, %arg4: memref<8x128xf32, #tpu.memory_space<vmem>>) attributes {dimension_semantics = [#tpu.dimension_semantics<parallel>], iteration_bounds = array<i64: 1>, scalar_prefetch = 0 : i64, scratch_operands = 0 : i64, tpu.core_type = #tpu.core_type<tc>, window_params = [{transform_indices = @transform_0, window_bounds = array<i64: 8, 8>}, {pipeline_mode = #tpu.pipeline_mode<synchronous>, transform_indices = @transform_1, window_bounds = array<i64: 8, 128>}, {pipeline_mode = #tpu.pipeline_mode<synchronous>, transform_indices = @transform_2, window_bounds = array<i64: 1, 128>}, {transform_indices = @transform_3, window_bounds = array<i64: 8, 128>}]} {
    %c0 = arith.constant 0 : index
    %c0_0 = arith.constant 0 : index
    %0 = vector.load %arg1[%c0, %c0_0] : memref<8x8xf32, #tpu.memory_space<vmem>>, vector<8x8xf32>
    %c0_1 = arith.constant 0 : index
    %c0_2 = arith.constant 0 : index
    %1 = vector.load %arg2[%c0_1, %c0_2] : memref<8x128xf32, #tpu.memory_space<vmem>>, vector<8x128xf32>
    %cst = arith.constant dense<0.000000e+00> : vector<8x128xf32>
    %2 = tpu.matmul %0, %1, %cst {dimension_numbers = #tpu.dot_dimension_numbers<[1], [0], [0], [1], [0, 0, 1, 1], [], []>, precision = #tpu.contract_precision<fp32>} : vector<8x8xf32>, vector<8x128xf32>, vector<8x128xf32> -> vector<8x128xf32>
    %c0_3 = arith.constant 0 : index
    %c0_4 = arith.constant 0 : index
    %3 = vector.load %arg3[%c0_3, %c0_4] : memref<1x128xf32, #tpu.memory_space<vmem>>, vector<1x128xf32>
    %4 = vector.broadcast %3 : vector<1x128xf32> to vector<8x128xf32>
    %5 = arith.addf %2, %4 : vector<8x128xf32>
    %6 = math.sin %5 : vector<8x128xf32>
    %c0_5 = arith.constant 0 : index
    %c0_6 = arith.constant 0 : index
    %7 = vector.load %arg4[%c0_5, %c0_6] : memref<8x128xf32, #tpu.memory_space<vmem>>, vector<8x128xf32>
    tpu.vector_store %arg4[%c0_5, %c0_6], %6 {strides = array<i32>} : memref<8x128xf32, #tpu.memory_space<vmem>>, vector<8x128xf32>,
    return
  }
  func.func @transform_0(%arg0: i32) -> (i32, i32) {
    %c0_i32 = arith.constant 0 : i32
    %c0_i32_0 = arith.constant 0 : i32
    return %arg0, %c0_i32 : i32, i32
  }
  func.func @transform_1(%arg0: i32) -> (i32, i32) {
    %c0_i32 = arith.constant 0 : i32
    %c0_i32_0 = arith.constant 0 : i32
    %c0_i32_1 = arith.constant 0 : i32
    return %c0_i32, %c0_i32_0 : i32, i32
  }
  func.func @transform_2(%arg0: i32) -> (i32, i32) {
    %c0_i32 = arith.constant 0 : i32
    %c0_i32_0 = arith.constant 0 : i32
    %c0_i32_1 = arith.constant 0 : i32
    return %c0_i32, %c0_i32_0 : i32, i32
  }
  func.func @transform_3(%arg0: i32) -> (i32, i32) {
    %c0_i32 = arith.constant 0 : i32
    %c0_i32_0 = arith.constant 0 : i32
    return %arg0, %c0_i32 : i32, i32
  }
}

</mosaic_0001>

<bundles_post_ra>
// kernel: tile.16
= control target key start
LH: loop header
LB: loop body
LE: loop exit
PB: predicated region body
PF: predicated region fallthrough
CT: control target
= control target key end

     0   :  { %s22_s0 = inlined_call_operand.vmem [shape: f32[32], index: 0, kind: input, shape index: {}]   ;;  %s23_s1 = inlined_call_operand.vmem [shape: f32[4,32], index: 1, kind: output, shape index: {}]  }
   0x1   :  { %v4_v0 = vld [vmem:[%s22_s0] ss:$0 sm:$0xff] }
   0x2   :  { %5 = vst [vmem:[%s23_s1] sm:$0xf] %v4_v0 }

// kernel: tile.12
= control target key start
LH: loop header
LB: loop body
LE: loop exit
PB: predicated region body
PF: predicated region fallthrough
CT: control target
= control target key end

     0   :  { %s37_s8 = smov 32   ;;  %s38_s9 = smov 64   ;;  %vm7_vm0 = vcmask 261120   ;;  %vm13_vm1 = vcmask 1048320   ;;  %vm19_vm2 = vcmask 785920   ;;  %vm25_vm3 = vcmask 523520   ;;  %s55_s0 = inlined_call_operand.vmem [shape: f32[4,32], index: 0, kind: input, shape index: {}]   ;;  %s56_s1 = inlined_call_operand.vmem [shape: f32[1,128], index: 1, kind: output, shape index: {}]  }
   0x1   :  { %v4_v0 = vld [vmem:[%s55_s0] sm:$0xf]  ;;  %s36_s0 = smov 96  }
   0x2   :  { %5 = vst [vmem:[#allocation1] sm:$0xf] %v4_v0 }
   0x9   :  { %v10_v1 = vld [vmem:[#allocation1 + $0x3] sm:$0x1]   ;;  %v22_v2 = vld [vmem:[#allocation1 + $0x1] sm:$0x1]   ;;  %v16_v3 = vld [vmem:[#allocation1 + $0x2] sm:$0x1]  }
   0xa   :  { %11 = vrot.lane.b32.xlu0 %v10_v1, %s36_s0  ;;  %23 = vrot.lane.b32.xlu1 %v22_v2, %s37_s8  ;;  %v6_v4 = vld [vmem:[#allocation1] sm:$0x1]  }
   0xb   :  { %8 = vst.msk [vmem:[#allocation0] sm:$0x1] %vm7_vm0, %v6_v4  }
  0x12   :  { %17 = vrot.lane.b32.xlu0 %v16_v3, %s38_s9 }
  0x7c   :  { %v12_v5 = vpop.permute.xlu0 %11   ;;  %v24_v6 = vpop.permute.xlu1 %23  }
  0x7d   :  { %14 = vst.msk [vmem:[#allocation0] sm:$0x1] %vm13_vm1, %v12_v5  }
  0x84   :  { %v18_v7 = vpop.permute.xlu0 %17  }
  0x85   :  { %20 = vst.msk [vmem:[#allocation0] sm:$0x1] %vm19_vm2, %v18_v7  }
  0x86   :  { %26 = vst.msk [vmem:[#allocation0] sm:$0x1] %vm25_vm3, %v24_v6  }
  0x8d   :  { %v29_v8 = vld [vmem:[#allocation0] sm:$0x1] }
  0x8e   :  { %32 = vst [vmem:[%s56_s1] sm:$0x1] %v29_v8 }

// kernel: sinusoidal_pos_emb.1
= control target key start
LH: loop header
LB: loop body
LE: loop exit
PB: predicated region body
PF: predicated region fallthrough
CT: control target
= control target key end

     0   :  { %vm20_vm0 = vcmask 64512   ;;  %v341_v37 = vmov 683565275   ;;  %v342_v39 = vmov 2475754826   ;;  %s436_s1 = inlined_call_operand.vmem [shape: f32[8,128], index: 1, kind: input, shape index: {}]   ;;  %s437_s0 = inlined_call_operand.vmem [shape: f32[8,8], index: 0, kind: input, shape index: {}]   ;;  %s438_s2 = inlined_call_operand.vmem [shape: f32[1,128], index: 2, kind: input, shape index: {}]   ;;  %s439_s3 = inlined_call_operand.vmem [shape: f32[8,128], index: 3, kind: output, shape index: {}]  }
   0x1   :  { %v15_v0 = vld [vmem:[%s436_s1] sm:$0xff]  ;;  %v343_v42 = vmov 2131351028   ;;  %v344_v45 = vmov 2102212464  }
   0x2   :  { %v14_v1 = vld [vmem:[%s437_s0] sm:$0xff]  ;;  %v39_v2 = vand.u32 4294901760, %v15_v0  ;;  %v345_v48 = vmov 920167782   ;;  %v346_v51 = vmov 1326507024  }
   0x3   :  { %v22_v3 = vsel %vm20_vm0, %v14_v1, 0  ;;  %v340_v13 = vld [vmem:[%s438_s2] ss:$0 sm:$0xff] }
   0x4   :  { %v41_v4 = vand.u32 4294901760, %v22_v3  ;;  %v66_v5 = vsub.f32 %v15_v0, %v39_v2  ;;  %40 = vmatpush.msra.mxu0 %v39_v2  ;;  %116 = vmatpush.msra.mxu3 %v39_v2 }
   0x6   :  { %v42_v6 = vsub.f32 %v22_v3, %v41_v4  ;;  %93 = vmatpush.msra.mxu2 %v66_v5  ;;  %v67_v7 = vand.u32 4294901760, %v66_v5 }
   0x8   :  { %96 = vmatmul.f32.vlgmr.msra.gmra.mxu2 %v42_v6  ;;  %v43_v8 = vand.u32 4294901760, %v42_v6  ;;  %142 = vmatpush.msrb.mxu0 %v67_v7  ;;  %v68_v9 = vsub.f32 %v66_v5, %v67_v7 }
   0xa   :  { %v44_v10 = vsub.f32 %v42_v6, %v43_v8  ;;  %120 = vmatmul.f32.vlgmr.msra.gmra.mxu3 %v43_v8  ;;  %v69_v11 = vand.u32 4294901760, %v68_v9 }
   0xc   :  { %v45_v12 = vand.u32 4294901760, %v44_v10  ;;  %70 = vmatpush.msra.mxu1 %v69_v11 }
   0xd   :  { %72 = vmatmul.f32.vlgmr.msra.gmra.mxu1 %v41_v4 }
   0xe   :  { %46 = vmatmul.f32.vlgmr.msra.gmra.mxu0 %v45_v12  ;;  %164 = vmatpush.msrb.mxu1 %v39_v2 }
  0x15   :  { %166 = vmatmul.f32.vlgmr.msrb.gmra.mxu1 %v41_v4 }
  0x16   :  { %144 = vmatmul.f32.vlgmr.msrb.gmra.mxu0 %v41_v4 }
  0x8a   :  { %v73_v15 = vpop.f32.mrf.mxu1 }
  0x8b   :  { %v47_v14 = vpop.f32.mrf.mxu0  ;;  %v97_v17 = vpop.f32.mrf.mxu2 }
  0x8c   :  { %v48_v16 = vadd.f32 %v340_v13, %v47_v14 }
  0x8d   :  { %v121_v19 = vpop.f32.mrf.mxu3 }
  0x8e   :  { %v74_v18 = vadd.f32 %v73_v15, %v48_v16 }
  0x90   :  { %v98_v20 = vadd.f32 %v97_v17, %v74_v18 }
  0x92   :  { %v122_v21 = vadd.f32 %v121_v19, %v98_v20  ;;  %v167_v23 = vpop.f32.mrf.mxu1 }
  0x93   :  { %v145_v22 = vpop.f32.mrf.mxu0 }
  0x94   :  { %v146_v24 = vadd.f32 %v145_v22, %v122_v21  ;;  %v347_v21 = vmov 0  }
  0x96   :  { %v377_v25 = vadd.f32 %v167_v23, %v146_v24 }
  0x98   :  { %v173_v26 = vand.u32 2139095040, %v377_v25  ;;  %v170_v29 = vand.u32 2147483647, %v377_v25  ;;  %vm172_vm13 = vcmp.lt.s32.totalorder %v377_v25, 0 }
  0x9a   :  { %v174_v27 = vshrl.u32 %v173_v26, 23  ;;  %v177_v31 = vand.u32 8388607, %v170_v29  ;;  %vm171_vm14 = vcmp.le.f32.partialorder %v170_v29, 0.7853982 }
  0x9c   :  { %v330_v28 = vadd.s32 4294967169, %v174_v27  ;;  %v178_v35 = vor.u32 8388608, %v177_v31 }
  0x9e   :  { %v180_v30 = vadd.s32 1, %v330_v28  ;;  %v394_v58 = vshll.u32 %v178_v35, 8 }
  0xa0   :  { %vm181_vm1 = vcmp.gt.s32.totalorder %v180_v30, 0  ;;  %v219_v3 = vand.u32 65535, %v394_v58  ;;  %v220_v4 = vshrl.u32 %v394_v58, 16 }
  0xa1   :  { %v182_v32 = vsel %vm181_vm1, %v180_v30, 0 }
  0xa2   :  { %v184_v33 = vand.u32 31, %v182_v32  ;;  %v385_v36 = vshrl.u32 %v182_v32, 5 }
  0xa4   :  { %v383_v34 = vsub.s32 32, %v184_v33  ;;  %v187_v38 = vshll.u32 %v341_v37, %v184_v33  ;;  %v190_v40 = vshll.u32 %v342_v39, %v184_v33  ;;  %v193_v44 = vshll.u32 %v343_v42, %v184_v33 }
  0xa5   :  { %v196_v47 = vshll.u32 %v344_v45, %v184_v33  ;;  %v199_v50 = vshll.u32 %v345_v48, %v184_v33  ;;  %vm202_vm2 = vcmp.lt.s32.totalorder %v385_v36, 1  ;;  %vm205_vm3 = vcmp.lt.s32.totalorder %v385_v36, 4 }
  0xa6   :  { %v188_v41 = vshrl.u32 %v342_v39, %v383_v34  ;;  %v191_v43 = vshrl.u32 %v343_v42, %v383_v34  ;;  %v194_v46 = vshrl.u32 %v344_v45, %v383_v34  ;;  %v197_v49 = vshrl.u32 %v345_v48, %v383_v34 }
  0xa7   :  { %v200_v52 = vshrl.u32 %v346_v51, %v383_v34  ;;  %vm204_vm4 = vcmp.lt.s32.totalorder %v385_v36, 3  ;;  %vm203_vm5 = vcmp.lt.s32.totalorder %v385_v36, 2  ;;  %v186_v32 = vshrl.u32 %v341_v37, %v383_v34 }
  0xa8   :  { %v189_v53 = vor.u32 %v188_v41, %v187_v38  ;;  %v192_v54 = vor.u32 %v191_v43, %v190_v40  ;;  %v195_v55 = vor.u32 %v194_v46, %v193_v44  ;;  %v198_v56 = vor.u32 %v197_v49, %v196_v47 }
  0xa9   :  { %v201_v57 = vor.u32 %v200_v52, %v199_v50 }
  0xaa   :  { %v210_v59 = vsel %vm202_vm2, %v189_v53, %v192_v54  ;;  %v214_v60 = vsel %vm202_vm2, %v192_v54, %v195_v55  ;;  %v211_v61 = vsel %vm205_vm3, %v198_v56, 920167782  ;;  %v207_v28 = vsel %vm205_vm3, %v195_v55, 2102212464 }
  0xab   :  { %v215_v62 = vsel %vm205_vm3, %v201_v57, 1326507024  ;;  %v212_v63 = vsel %vm204_vm4, %v195_v55, %v211_v61  ;;  %v206_v41 = vsel %vm202_vm2, %v186_v32, %v189_v53  ;;  %v208_v42 = vsel %vm204_vm4, %v192_v54, %v207_v28 }
  0xac   :  { %v216_v0 = vsel %vm204_vm4, %v198_v56, %v215_v62  ;;  %v213_v1 = vsel %vm203_vm5, %v210_v59, %v212_v63  ;;  %v209_v34 = vsel %vm203_vm5, %v206_v41, %v208_v42  ;;  %vm313_vm2 = vweird.f32 %v377_v25 }
  0xad   :  { %v217_v2 = vsel %vm203_vm5, %v214_v60, %v216_v0  ;;  %v243_v7 = vand.u32 65535, %v213_v1  ;;  %v244_v8 = vshrl.u32 %v213_v1, 16  ;;  %v263_v50 = vmul.u32 %v394_v58, %v209_v34 }
  0xae   :  { %v221_v5 = vand.u32 65535, %v217_v2  ;;  %v222_v6 = vshrl.u32 %v217_v2, 16 }
  0xaf   :  { %v246_v11 = vmul.u32 %v244_v8, %v219_v3  ;;  %v247_v12 = vmul.u32 %v243_v7, %v220_v4  ;;  %v245_v16 = vmul.u32 %v243_v7, %v219_v3  ;;  %v248_v20 = vmul.u32 %v244_v8, %v220_v4 }
  0xb0   :  { %v224_v9 = vmul.u32 %v222_v6, %v219_v3  ;;  %v225_v10 = vmul.u32 %v221_v5, %v220_v4  ;;  %v223_v13 = vmul.u32 %v221_v5, %v219_v3  ;;  %v226_v15 = vmul.u32 %v222_v6, %v220_v4 }
  0xb1   :  { %v249_v17 = vshll.u32 %v246_v11, 16  ;;  %v251_v23 = vshll.u32 %v247_v12, 16  ;;  %v250_v39 = vshrl.u32 %v246_v11, 16  ;;  %v252_v45 = vshrl.u32 %v247_v12, 16 }
  0xb2   :  { %v227_v14 = vshll.u32 %v224_v9, 16  ;;  %v229_v18 = vshll.u32 %v225_v10, 16  ;;  %v228_v33 = vshrl.u32 %v224_v9, 16  ;;  %v230_v43 = vshrl.u32 %v225_v10, 16 }
  0xb3   :  { %vm253_vm7 = vc.u32 %v245_v16, %v249_v17  ;;  %v255_v24 = vadd.s32 %v249_v17, %v245_v16 }
  0xb4   :  { %vm231_vm6 = vc.u32 %v223_v13, %v227_v14  ;;  %v233_v19 = vadd.s32 %v227_v14, %v223_v13  ;;  %v254_v27 = vsel %vm253_vm7, 1, %v347_v21 }
  0xb5   :  { %v232_v22 = vsel %vm231_vm6, 1, %v347_v21  ;;  %v256_v31 = vadd.s32 %v254_v27, %v248_v20  ;;  %vm257_vm9 = vc.u32 %v255_v24, %v251_v23  ;;  %v259_v48 = vadd.s32 %v255_v24, %v251_v23 }
  0xb6   :  { %v234_v26 = vadd.s32 %v232_v22, %v226_v15  ;;  %vm235_vm8 = vc.u32 %v233_v19, %v229_v18  ;;  %v258_v38 = vsel %vm257_vm9, 1, %v347_v21 }
  0xb7   :  { %v236_v30 = vsel %vm235_vm8, 1, %v347_v21  ;;  %v260_v40 = vadd.s32 %v258_v38, %v256_v31 }
  0xb8   :  { %v238_v35 = vadd.s32 %v236_v30, %v234_v26 }
  0xb9   :  { %v261_v46 = vadd.s32 %v260_v40, %v250_v39 }
  0xba   :  { %v239_v44 = vadd.s32 %v238_v35, %v228_v33 }
  0xbb   :  { %v262_v37 = vadd.s32 %v261_v46, %v252_v45 }
  0xbc   :  { %v240_v47 = vadd.s32 %v239_v44, %v230_v43 }
  0xbd   :  { %v266_v49 = vadd.s32 1, %v262_v37 }
  0xbe   :  { %vm265_vm10 = vc.u32 %v240_v47, %v259_v48  ;;  %v264_v36 = vadd.s32 %v259_v48, %v240_v47 }
  0xbf   :  { %v267_v51 = vsel %vm265_vm10, %v266_v49, %v262_v37 }
  0xc0   :  { %v268_v52 = vadd.s32 %v267_v51, %v263_v50 }
  0xc2   :  { %v269_v53 = vadd.s32 536870912, %v268_v52 }
  0xc4   :  { %v270_v55 = vshrl.u32 %v269_v53, 30 }
  0xc6   :  { %v271_v56 = vshll.u32 %v270_v55, 30  ;;  %v294_v11 = vsub.s32 4, %v270_v55 }
  0xc8   :  { %v272_v54 = vsub.s32 %v268_v52, %v271_v56  ;;  %v295_v16 = vsel %vm172_vm13, %v294_v11, %v270_v55 }
  0xc9   :  { %v297_v19 = vsel %vm171_vm14, 0, %v295_v16 }
  0xca   :  { %vm273_vm11 = vcmp.lt.s32.totalorder %v272_v54, 0  ;;  %v274_v57 = vsub.s32 0, %v272_v54  ;;  %v314_v24 = vadd.s32 3, %v297_v19 }
  0xcc   :  { %v275_v59 = vsel %vm273_vm11, %v274_v57, %v272_v54  ;;  %v315_v30 = vand.u32 3, %v314_v24 }
  0xcd   :  { %v276_v60 = vclz %v275_v59 }
  0xce   :  { %vm317_vm15 = vcmp.eq.s32.totalorder %v315_v30, 0  ;;  %vm320_vm0 = vcmp.eq.s32.totalorder %v315_v30, 2  ;;  %vm316_vm1 = vcmp.lt.s32.totalorder %v315_v30, 2 }
  0xcf   :  { %v331_v61 = vadd.s32 4294967294, %v276_v60 }
  0xd1   :  { %vm332_vm12 = vcmp.lt.s32.totalorder %v331_v61, 0 }
  0xd2   :  { %v279_v62 = vsel %vm332_vm12, 0, %v331_v61 }
  0xd3   :  { %v280_v63 = vsub.s32 32, %v279_v62  ;;  %v284_v0 = vsub.s32 4294967266, %v279_v62  ;;  %v281_v1 = vshll.u32 %v272_v54, %v279_v62 }
  0xd5   :  { %v282_v2 = vshrl.u32 %v264_v36, %v280_v63  ;;  %v285_v3 = vadd.s32 127, %v284_v0 }
  0xd7   :  { %v283_v58 = vor.u32 %v282_v2, %v281_v1  ;;  %v286_v4 = vshll.u32 %v285_v3, 23 }
  0xd9   :  { %v287_v5 = vor.u32 4788187, %v286_v4  ;;  %v290_v7 = vcvt.s32.f32 %v283_v58 }
  0xdb   :  { %v288_v6 = vand.u32 2147483647, %v287_v5 }
  0xdd   :  { %v291_v8 = vmul.f32 %v290_v7, %v288_v6 }
  0xdf   :  { %v292_v9 = vxor.u32 2147483648, %v291_v8 }
  0xe1   :  { %v293_v10 = vsel %vm172_vm13, %v292_v9, %v291_v8 }
  0xe2   :  { %v296_v12 = vsel %vm171_vm14, %v377_v25, %v293_v10 }
  0xe3   :  { %v298_v13 = vmul.f32 %v296_v12, %v296_v12 }
  0xe5   :  { %v299_v14 = vmul.f32 -0.001358992, %v298_v13  ;;  %v306_v15 = vmul.f32 -0.00019511016, %v298_v13 }
  0xe7   :  { %v300_v17 = vadd.f32 0.041655596, %v299_v14  ;;  %v307_v18 = vadd.f32 0.008332121, %v306_v15 }
  0xe9   :  { %v301_v20 = vmul.f32 %v300_v17, %v298_v13  ;;  %v308_v21 = vmul.f32 %v307_v18, %v298_v13 }
  0xeb   :  { %v302_v22 = vadd.f32 -0.4999988, %v301_v20  ;;  %v309_v23 = vadd.f32 -0.16666654, %v308_v21 }
  0xed   :  { %v303_v26 = vmul.f32 %v302_v22, %v298_v13  ;;  %v310_v27 = vmul.f32 %v309_v23, %v298_v13 }
  0xef   :  { %v304_v28 = vadd.f32 1.0, %v303_v26  ;;  %v311_v29 = vadd.f32 1.0, %v310_v27 }
  0xf1   :  { %v312_v31 = vmul.f32 %v311_v29, %v296_v12  ;;  %v321_v32 = vxor.u32 2147483648, %v304_v28 }
  0xf3   :  { %v318_v33 = vxor.u32 2147483648, %v312_v31  ;;  %v322_v38 = vsel %vm320_vm0, %v321_v32, %v312_v31 }
  0xf5   :  { %v319_v35 = vsel %vm317_vm15, %v304_v28, %v318_v33 }
  0xf6   :  { %v323_v39 = vsel %vm316_vm1, %v319_v35, %v322_v38 }
  0xf7   :  { %v324_v40 = vsel %vm313_vm2, nan, %v323_v39 }
  0xf8   :  { %325 = vst [vmem:[%s439_s3] sm:$0xff] %v324_v40 }

</bundles_post_ra>
